<compile_context>
chip_gen: v5e
topology: v5e:2x2
jax: 0.10.0
libtpu: 0.0.40
codegen_flags: <defaults>
</compile_context>

<pallas_src>
import jax
import jax.numpy as jnp
from jax.experimental import pallas as pl
from jax.experimental.pallas import tpu as pltpu


def _add_prompt_kernel(x_ref, prompt_ref, o_ref):
    # x_ref, o_ref: (Bt, C, H*W); prompt_ref: (1, C, H*W) (resident, broadcast over Bt).
    # One full-width unmasked store per block.
    o_ref[...] = x_ref[...] + prompt_ref[...]


def fixed_patch_prompter(x: jax.Array, patch: jax.Array) -> jax.Array:
    """x: [B, C, isize, isize], patch: [1, C, psize, psize] -> x + zero-padded patch."""
    B, C, H, W = x.shape
    _, Cp, P, Pw = patch.shape
    assert Cp == C and P <= H and Pw <= W

    # Build the padded prompt once in the wrapper (tiny, shared across the batch).
    prompt = jnp.zeros((1, C, H, W), dtype=x.dtype)
    prompt = prompt.at[:, :, :P, :Pw].set(patch.astype(x.dtype))

    HW = H * W
    x_flat = x.reshape(B, C, HW)            # lane-dense minor dim
    prompt_flat = prompt.reshape(1, C, HW)

    # Batch-tile size: target ~2 MiB per block (safe for v7x's smaller VMEM with
    # double-buffered in + out), amortizing per-grid-step overhead.
    plane_bytes = C * HW * x.dtype.itemsize
    target_bytes = 2 * 1024 * 1024
    bt = int(max(1, min(B, target_bytes // max(plane_bytes, 1))))
    grid = (pl.cdiv(B, bt),)

    out_flat = pl.pallas_call(
        _add_prompt_kernel,
        out_shape=jax.ShapeDtypeStruct((B, C, HW), x.dtype),
        grid_spec=pl.GridSpec(
            grid=grid,
            in_specs=[
                # Block last-two dims equal full array dims -> (8,128) constraint OK.
                pl.BlockSpec((bt, C, HW), lambda i: (i, 0, 0)),
                # Constant index_map: prompt loaded once, stays resident in VMEM.
                pl.BlockSpec((1, C, HW), lambda i: (0, 0, 0)),
            ],
            out_specs=pl.BlockSpec((bt, C, HW), lambda i: (i, 0, 0)),
        ),
        compiler_params=pltpu.CompilerParams(
            dimension_semantics=("parallel",),
        ),
    )(x_flat, prompt_flat)

    return out_flat.reshape(B, C, H, W)


def reference(x, patch):
    B, C, H, W = x.shape
    P = patch.shape[-1]
    prompt = jnp.zeros((1, C, H, W), dtype=x.dtype)
    prompt = prompt.at[:, :, :P, :P].set(patch)
    return x + prompt


if __name__ == "__main__":
    # Small shapes consistent with the module: image_size=16, prompt_size=8, 3 channels.
    B, C, isize, psize = 2, 3, 16, 8

    key = jax.random.PRNGKey(0)
    kx, kp = jax.random.split(key)

    x = jax.random.normal(kx, (B, C, isize, isize), dtype=jnp.float32)
    # Deterministic "randn" parameter init (identity=False in the module).
    patch = jax.random.normal(kp, (1, C, psize, psize), dtype=jnp.float32)

    out = fixed_patch_prompter(x, patch)
    out = jax.block_until_ready(out)

    ref = reference(x, patch)
    assert out.shape == (B, C, isize, isize)
    assert jnp.allclose(out, ref, atol=1e-6, rtol=1e-6)

    print("KERNEL_OK")
</pallas_src>

<mosaic_0001>
module attributes {stable_mosaic.version = 11 : i64} {
  func.func @_add_prompt_kernel(%arg0: i32, %arg1: memref<2x3x256xf32, #tpu.memory_space<vmem>>, %arg2: memref<1x3x256xf32, #tpu.memory_space<vmem>>, %arg3: memref<2x3x256xf32, #tpu.memory_space<vmem>>) attributes {dimension_semantics = [#tpu.dimension_semantics<parallel>], iteration_bounds = array<i64: 1>, scalar_prefetch = 0 : i64, scratch_operands = 0 : i64, tpu.core_type = #tpu.core_type<tc>, window_params = [{transform_indices = @transform_0, window_bounds = array<i64: 2, 3, 256>}, {pipeline_mode = #tpu.pipeline_mode<synchronous>, transform_indices = @transform_1, window_bounds = array<i64: 1, 3, 256>}, {transform_indices = @transform_2, window_bounds = array<i64: 2, 3, 256>}]} {
    %c0 = arith.constant 0 : index
    %c0_0 = arith.constant 0 : index
    %c0_1 = arith.constant 0 : index
    %0 = vector.load %arg1[%c0, %c0_0, %c0_1] : memref<2x3x256xf32, #tpu.memory_space<vmem>>, vector<2x3x256xf32>
    %c0_2 = arith.constant 0 : index
    %c0_3 = arith.constant 0 : index
    %c0_4 = arith.constant 0 : index
    %1 = vector.load %arg2[%c0_2, %c0_3, %c0_4] : memref<1x3x256xf32, #tpu.memory_space<vmem>>, vector<1x3x256xf32>
    %2 = vector.broadcast %1 : vector<1x3x256xf32> to vector<2x3x256xf32>
    %3 = arith.addf %0, %2 : vector<2x3x256xf32>
    %c0_5 = arith.constant 0 : index
    %c0_6 = arith.constant 0 : index
    %c0_7 = arith.constant 0 : index
    %4 = vector.load %arg3[%c0_5, %c0_6, %c0_7] : memref<2x3x256xf32, #tpu.memory_space<vmem>>, vector<2x3x256xf32>
    tpu.vector_store %arg3[%c0_5, %c0_6, %c0_7], %3 {strides = array<i32>} : memref<2x3x256xf32, #tpu.memory_space<vmem>>, vector<2x3x256xf32>,
    return
  }
  func.func @transform_0(%arg0: i32) -> (i32, i32, i32) {
    %c0_i32 = arith.constant 0 : i32
    %c0_i32_0 = arith.constant 0 : i32
    %c0_i32_1 = arith.constant 0 : i32
    return %arg0, %c0_i32, %c0_i32_0 : i32, i32, i32
  }
  func.func @transform_1(%arg0: i32) -> (i32, i32, i32) {
    %c0_i32 = arith.constant 0 : i32
    %c0_i32_0 = arith.constant 0 : i32
    %c0_i32_1 = arith.constant 0 : i32
    %c0_i32_2 = arith.constant 0 : i32
    return %c0_i32, %c0_i32_0, %c0_i32_1 : i32, i32, i32
  }
  func.func @transform_2(%arg0: i32) -> (i32, i32, i32) {
    %c0_i32 = arith.constant 0 : i32
    %c0_i32_0 = arith.constant 0 : i32
    %c0_i32_1 = arith.constant 0 : i32
    return %arg0, %c0_i32, %c0_i32_0 : i32, i32, i32
  }
}

</mosaic_0001>

<bundles_post_ra>
// kernel: tpu_custom_call.1
= control target key start
LH: loop header
LB: loop body
LE: loop exit
PB: predicated region body
PF: predicated region fallthrough
CT: control target
= control target key end

     0   :  { %s52_s0 = inlined_call_operand.vmem [shape: f32[2,3,256], index: 0, kind: input, shape index: {}]   ;;  %s53_s1 = inlined_call_operand.vmem [shape: f32[1,3,256], index: 1, kind: input, shape index: {}]   ;;  %s54_s2 = inlined_call_operand.vmem [shape: f32[2,3,256], index: 2, kind: output, shape index: {}]  }
   0x1   :  { %v11_v0 = vld [vmem:[%s52_s0] sm:$0x77]  ;;  %v12_v2 = vld [vmem:[%s52_s0 + $0x8] sm:$0x77] }
   0x2   :  { %v13_v1 = vld [vmem:[%s53_s1] sm:$0x77] }
   0x3   :  { %v14_v3 = vadd.f32 %v13_v1, %v11_v0  ;;  %v15_v4 = vadd.f32 %v13_v1, %v12_v2 }
   0x5   :  { %16 = vst [vmem:[%s54_s2] sm:$0x77] %v14_v3 }
   0x6   :  { %17 = vst [vmem:[%s54_s2 + $0x8] sm:$0x77] %v15_v4 }

</bundles_post_ra>
